<compile_context>
chip_gen: v7x
topology: tpu7x:2x2x1
jax: 0.10.0
libtpu: 0.0.40
codegen_flags: <defaults>
</compile_context>

<pallas_src>
import math

import jax
import jax.numpy as jnp
from jax import lax
from jax.experimental import pallas as pl
from jax.experimental.pallas import tpu as pltpu


def _round_up(n, m):
    return ((n + m - 1) // m) * m


# --------------------------------------------------------------------------- #
# Pallas kernel
# --------------------------------------------------------------------------- #
def _make_decoder_kernel(sdf_scale, mm_dtype):
    scale = float(sdf_scale)

    def kernel(x_ref, wvo_ref, bvo_ref, wl_ref, bl_ref, out_ref):
        # x block: (tile_m, d_in), points-major as the caller provides it.
        x = x_ref[...].astype(mm_dtype)

        # h^T = Wvo^T @ x^T, expressed as the a @ b.T contraction (both
        # operands contract their last dim -- MXU-native, no explicit
        # transpose op).  Result is (hidden, tile_m): channels on sublanes,
        # points on lanes (lane-dense).
        h = lax.dot_general(
            wvo_ref[...], x,
            dimension_numbers=(((1,), (1,)), ((), ())),
            preferred_element_type=jnp.float32)
        h = jnp.maximum(h + bvo_ref[...], 0.0)            # f32 bias + ReLU

        # lout: (out_dim, hidden) @ (hidden, tile_m) -> (out_dim, tile_m)
        out = jnp.dot(wl_ref[...], h.astype(mm_dtype),
                      preferred_element_type=jnp.float32)

        # sdf_scale in the f32 epilogue (one cheap VPU multiply per tile).
        out_ref[...] = (out + bl_ref[...]) * scale

    return kernel


# --------------------------------------------------------------------------- #
# Wrapper
# --------------------------------------------------------------------------- #
def decoder_forward(x, params, *, num_heads, head_dim, sdf_scale,
                    tm=2048, use_bf16=True):
    """Pallas forward for Decoder.sdf().

    x: (N, input_dim) point features.  Returns (N,) when out_dim == 1
    (matching torch's double squeeze), else (N, out_dim).

    num_heads / head_dim are accepted for API parity but unused: with
    seq_len == 1 the attention block reduces to the value projection.
    """
    del num_heads, head_dim
    N, d_in = x.shape
    hidden = params["wo"].shape[0]
    out_dim = params["wl"].shape[1]

    mm_dtype = jnp.bfloat16 if use_bf16 else jnp.float32

    # Fold value-projection + fc_out into a single affine map (exact: no
    # nonlinearity between them).  Tiny matrices -> negligible cost; use
    # HIGHEST precision so the fold itself adds no rounding error.
    hi = lax.Precision.HIGHEST
    wvo = jnp.dot(params["wv"], params["wo"], precision=hi)            # (d_in, hidden)
    bvo = jnp.dot(params["bv"], params["wo"], precision=hi) + params["bo"]  # (1, hidden)

    wvo_t = wvo.T.astype(mm_dtype)                   # (hidden, d_in)
    bvo_t = bvo.T.astype(jnp.float32)                # (hidden, 1)
    wl_t = params["wl"].T.astype(mm_dtype)           # (out_dim, hidden)
    bl_t = params["bl"].T.astype(jnp.float32)        # (out_dim, 1)

    # Point tile: large (amortizes ~0.35us/grid-step), multiple of 256 (clean
    # 128-lane stores / MXU panels), but capped so the grid has >= 2 steps
    # when N allows (v7x has 2 TensorCores).  Tiny N -> single full block.
    tile_m = min(_round_up(int(tm), 256), _round_up(pl.cdiv(N, 2), 256))
    if tile_m >= N:
        tile_m = N
    grid = (pl.cdiv(N, tile_m),)

    weight_bytes = (wvo_t.size * wvo_t.dtype.itemsize
                    + wl_t.size * wl_t.dtype.itemsize
                    + (bvo_t.size + bl_t.size) * 4)
    cost = pl.CostEstimate(
        flops=int(2 * N * (d_in * hidden + hidden * out_dim)),
        transcendentals=0,
        bytes_accessed=int(N * d_in * x.dtype.itemsize + N * out_dim * 4
                           + grid[0] * weight_bytes),
    )

    def full_spec(a):
        return pl.BlockSpec(a.shape, lambda i, _nd=a.ndim: (0,) * _nd)

    grid_spec = pltpu.PrefetchScalarGridSpec(
        num_scalar_prefetch=0,
        grid=grid,
        in_specs=[pl.BlockSpec((tile_m, d_in), lambda i: (i, 0)),
                  full_spec(wvo_t), full_spec(bvo_t),
                  full_spec(wl_t), full_spec(bl_t)],
        out_specs=pl.BlockSpec((out_dim, tile_m), lambda i: (0, i)),
    )

    out = pl.pallas_call(
        _make_decoder_kernel(sdf_scale, mm_dtype),
        out_shape=jax.ShapeDtypeStruct((out_dim, N), jnp.float32),
        grid_spec=grid_spec,
        compiler_params=pltpu.CompilerParams(
            dimension_semantics=("parallel",)),
        cost_estimate=cost,
    )(x, wvo_t, bvo_t, wl_t, bl_t)

    # torch: .squeeze(1) twice -> (N, out_dim) then (N,) when out_dim == 1.
    return out[0] if out_dim == 1 else out.T


# --------------------------------------------------------------------------- #
# Pure-JAX reference (mirrors the full PyTorch math, seq_len == 1)
# --------------------------------------------------------------------------- #
def decoder_ref(x, params, *, num_heads, head_dim, sdf_scale):
    N = x.shape[0]
    hidden = num_heads * head_dim
    xs = x[:, None, :]                                               # (N, 1, D_in)

    def lin(a, w, b):
        return a @ w + b

    q = lin(xs, params["wq"], params["bq"]).reshape(N, 1, num_heads, head_dim).transpose(0, 2, 1, 3)
    k = lin(xs, params["wk"], params["bk"]).reshape(N, 1, num_heads, head_dim).transpose(0, 2, 1, 3)
    v = lin(xs, params["wv"], params["bv"]).reshape(N, 1, num_heads, head_dim).transpose(0, 2, 1, 3)
    energy = jnp.einsum("bhqd,bhkd->bhqk", q, k) / math.sqrt(head_dim)
    attn = jax.nn.softmax(energy, axis=-1)
    o = jnp.einsum("bhqk,bhkd->bhqd", attn, v).transpose(0, 2, 1, 3).reshape(N, 1, hidden)
    o = lin(o, params["wo"], params["bo"])
    h = jnp.maximum(o, 0.0)
    out = lin(h, params["wl"], params["bl"])[:, 0, :] * sdf_scale    # (N, out_dim)
    return out[:, 0] if out.shape[1] == 1 else out


# --------------------------------------------------------------------------- #
# Parameter construction (deterministic, synthetic)
# --------------------------------------------------------------------------- #
def make_params(key, input_dim, hidden_dim, out_dim):
    keys = jax.random.split(key, 10)

    def w(k, din, dout):  # stored as (in, out) == torch weight.T
        return jax.random.normal(k, (din, dout), jnp.float32) * 0.1

    def b(k, dout):
        return jax.random.normal(k, (1, dout), jnp.float32) * 0.01

    return {
        "wq": w(keys[0], input_dim, hidden_dim), "bq": b(keys[1], hidden_dim),
        "wk": w(keys[2], input_dim, hidden_dim), "bk": b(keys[3], hidden_dim),
        "wv": w(keys[4], input_dim, hidden_dim), "bv": b(keys[5], hidden_dim),
        "wo": w(keys[6], hidden_dim, hidden_dim), "bo": b(keys[7], hidden_dim),
        "wl": w(keys[8], hidden_dim, out_dim),   "bl": b(keys[9], out_dim),
    }


# --------------------------------------------------------------------------- #
# Main
# --------------------------------------------------------------------------- #
if __name__ == "__main__":
    # Config (matches the module's __init__ arithmetic):
    #   feature_dim=8, pos_input_dim=3, pos_encoding_band=2, use_gaussian_pe=False
    #   -> position_dim = 3 * (2*2 + 1) = 15, input_layer_count = 8 + 15 = 23
    #   mlp_bias_on=True, main_loss_type='bce',
    #   logistic_gaussian_ratio=0.55, sigma_sigmoid_m=0.1 -> sdf_scale = 0.055
    feature_dim, pos_input_dim, pos_band = 8, 3, 2
    position_dim = pos_input_dim * (2 * pos_band + 1)
    input_dim = feature_dim + position_dim                 # 23
    hidden_dim, num_heads, out_dim = 32, 4, 1
    head_dim = hidden_dim // num_heads
    sdf_scale = 0.55 * 0.1

    key = jax.random.PRNGKey(0)
    kx, kp, kx2 = jax.random.split(key, 3)
    params = make_params(kp, input_dim, hidden_dim, out_dim)

    # Multi-step grid with a ragged last tile (no wrapper-side padding).
    N = 1000
    x = jax.random.normal(kx, (N, input_dim), jnp.float32)
    ref = decoder_ref(x, params, num_heads=num_heads, head_dim=head_dim,
                      sdf_scale=sdf_scale)

    # f32 matmul-operand path (exact vs reference).
    out_f32 = decoder_forward(x, params, num_heads=num_heads, head_dim=head_dim,
                              sdf_scale=sdf_scale, use_bf16=False)
    out_f32 = jax.block_until_ready(out_f32)
    if out_f32.shape != ref.shape:
        raise AssertionError(f"shape mismatch {out_f32.shape} vs {ref.shape}")
    if not jnp.allclose(out_f32, ref, atol=1e-5, rtol=1e-5):
        raise AssertionError("Pallas kernel (f32) output mismatch vs JAX reference")

    # bf16 matmul-operand path (default for v6e/v7x; f32 accumulate + epilogue).
    out_bf16 = decoder_forward(x, params, num_heads=num_heads, head_dim=head_dim,
                               sdf_scale=sdf_scale, use_bf16=True)
    out_bf16 = jax.block_until_ready(out_bf16)
    if not jnp.allclose(out_bf16, ref, atol=5e-3, rtol=5e-2):
        raise AssertionError("Pallas kernel (bf16) output mismatch vs JAX reference")

    # Small-N single-block path (tile == full extent).
    Ns = 48
    xs = jax.random.normal(kx2, (Ns, input_dim), jnp.float32)
    refs = decoder_ref(xs, params, num_heads=num_heads, head_dim=head_dim,
                       sdf_scale=sdf_scale)
    outs = decoder_forward(xs, params, num_heads=num_heads, head_dim=head_dim,
                           sdf_scale=sdf_scale, use_bf16=False)
    outs = jax.block_until_ready(outs)
    if not jnp.allclose(outs, refs, atol=1e-5, rtol=1e-5):
        raise AssertionError("Pallas kernel (small-N) output mismatch vs JAX reference")

    print("KERNEL_OK")
</pallas_src>

<mosaic_0001>
module attributes {stable_mosaic.version = 11 : i64} {
  func.func @kernel(%arg0: i32, %arg1: memref<512x23xf32, #tpu.memory_space<vmem>>, %arg2: memref<32x23xf32, #tpu.memory_space<vmem>>, %arg3: memref<32x1xf32, #tpu.memory_space<vmem>>, %arg4: memref<1x32xf32, #tpu.memory_space<vmem>>, %arg5: memref<1x1xf32, #tpu.memory_space<vmem>>, %arg6: memref<1x512xf32, #tpu.memory_space<vmem>>) attributes {dimension_semantics = [#tpu.dimension_semantics<parallel>], iteration_bounds = array<i64: 2>, scalar_prefetch = 0 : i64, scratch_operands = 0 : i64, tpu.core_type = #tpu.core_type<tc>, window_params = [{transform_indices = @transform_0, window_bounds = array<i64: 512, 23>}, {pipeline_mode = #tpu.pipeline_mode<synchronous>, transform_indices = @transform_1, window_bounds = array<i64: 32, 23>}, {pipeline_mode = #tpu.pipeline_mode<synchronous>, transform_indices = @transform_2, window_bounds = array<i64: 32, 1>}, {pipeline_mode = #tpu.pipeline_mode<synchronous>, transform_indices = @transform_3, window_bounds = array<i64: 1, 32>}, {pipeline_mode = #tpu.pipeline_mode<synchronous>, transform_indices = @transform_4, window_bounds = array<i64: 1, 1>}, {transform_indices = @transform_5, window_bounds = array<i64: 1, 512>}]} {
    %c0 = arith.constant 0 : index
    %c0_0 = arith.constant 0 : index
    %0 = vector.load %arg1[%c0, %c0_0] : memref<512x23xf32, #tpu.memory_space<vmem>>, vector<512x23xf32>
    %c0_1 = arith.constant 0 : index
    %c0_2 = arith.constant 0 : index
    %1 = vector.load %arg2[%c0_1, %c0_2] : memref<32x23xf32, #tpu.memory_space<vmem>>, vector<32x23xf32>
    %cst = arith.constant dense<0.000000e+00> : vector<32x512xf32>
    %2 = tpu.matmul %1, %0, %cst {dimension_numbers = #tpu.dot_dimension_numbers<[1], [1], [0], [0], [0, 0, 1, 0], [], []>} : vector<32x23xf32>, vector<512x23xf32>, vector<32x512xf32> -> vector<32x512xf32>
    %c0_3 = arith.constant 0 : index
    %c0_4 = arith.constant 0 : index
    %3 = vector.load %arg3[%c0_3, %c0_4] : memref<32x1xf32, #tpu.memory_space<vmem>>, vector<32x1xf32>
    %4 = vector.broadcast %3 : vector<32x1xf32> to vector<32x512xf32>
    %5 = arith.addf %2, %4 : vector<32x512xf32>
    %cst_5 = arith.constant 0.000000e+00 : f32
    %6 = vector.broadcast %cst_5 : f32 to vector<32x512xf32>
    %7 = arith.maximumf %5, %6 : vector<32x512xf32>
    %c0_6 = arith.constant 0 : index
    %c0_7 = arith.constant 0 : index
    %8 = vector.load %arg4[%c0_6, %c0_7] : memref<1x32xf32, #tpu.memory_space<vmem>>, vector<1x32xf32>
    %cst_8 = arith.constant dense<0.000000e+00> : vector<1x512xf32>
    %9 = tpu.matmul %8, %7, %cst_8 {dimension_numbers = #tpu.dot_dimension_numbers<[1], [0], [0], [1], [0, 0, 1, 1], [], []>} : vector<1x32xf32>, vector<32x512xf32>, vector<1x512xf32> -> vector<1x512xf32>
    %c0_9 = arith.constant 0 : index
    %c0_10 = arith.constant 0 : index
    %10 = vector.load %arg5[%c0_9, %c0_10] : memref<1x1xf32, #tpu.memory_space<vmem>>, vector<1x1xf32>
    %11 = vector.broadcast %10 : vector<1x1xf32> to vector<1x512xf32>
    %12 = arith.addf %9, %11 : vector<1x512xf32>
    %cst_11 = arith.constant 5.500000e-02 : f32
    %13 = vector.broadcast %cst_11 : f32 to vector<1x512xf32>
    %14 = arith.mulf %12, %13 : vector<1x512xf32>
    %c0_12 = arith.constant 0 : index
    %c0_13 = arith.constant 0 : index
    %15 = vector.load %arg6[%c0_12, %c0_13] : memref<1x512xf32, #tpu.memory_space<vmem>>, vector<1x512xf32>
    tpu.vector_store %arg6[%c0_12, %c0_13], %14 {strides = array<i32>} : memref<1x512xf32, #tpu.memory_space<vmem>>, vector<1x512xf32>,
    return
  }
  func.func @transform_0(%arg0: i32) -> (i32, i32) {
    %c0_i32 = arith.constant 0 : i32
    %c0_i32_0 = arith.constant 0 : i32
    return %arg0, %c0_i32 : i32, i32
  }
  func.func @transform_1(%arg0: i32) -> (i32, i32) {
    %c0_i32 = arith.constant 0 : i32
    %c0_i32_0 = arith.constant 0 : i32
    %c0_i32_1 = arith.constant 0 : i32
    return %c0_i32, %c0_i32_0 : i32, i32
  }
  func.func @transform_2(%arg0: i32) -> (i32, i32) {
    %c0_i32 = arith.constant 0 : i32
    %c0_i32_0 = arith.constant 0 : i32
    %c0_i32_1 = arith.constant 0 : i32
    return %c0_i32, %c0_i32_0 : i32, i32
  }
  func.func @transform_3(%arg0: i32) -> (i32, i32) {
    %c0_i32 = arith.constant 0 : i32
    %c0_i32_0 = arith.constant 0 : i32
    %c0_i32_1 = arith.constant 0 : i32
    return %c0_i32, %c0_i32_0 : i32, i32
  }
  func.func @transform_4(%arg0: i32) -> (i32, i32) {
    %c0_i32 = arith.constant 0 : i32
    %c0_i32_0 = arith.constant 0 : i32
    %c0_i32_1 = arith.constant 0 : i32
    return %c0_i32, %c0_i32_0 : i32, i32
  }
  func.func @transform_5(%arg0: i32) -> (i32, i32) {
    %c0_i32 = arith.constant 0 : i32
    %c0_i32_0 = arith.constant 0 : i32
    return %c0_i32, %arg0 : i32, i32
  }
}

</mosaic_0001>

<bundles_post_ra>
// kernel: tpu_custom_call.1
= control target key start
LH: loop header
LB: loop body
LE: loop exit
PB: predicated region body
PF: predicated region fallthrough
CT: control target
= control target key end

     0   :  { %s1716_s0 = inlined_call_operand.vmem [shape: f32[1000,23], index: 0, kind: input, shape index: {}]   ;;  %s1717_s1 = inlined_call_operand.vmem [shape: f32[32,23], index: 1, kind: input, shape index: {}]   ;;  %s1718_s2 = inlined_call_operand.vmem [shape: f32[32,1], index: 2, kind: input, shape index: {}]   ;;  %s1719_s3 = inlined_call_operand.vmem [shape: f32[1,32], index: 3, kind: input, shape index: {}]   ;;  %s1720_s4 = inlined_call_operand.<no memory space> [shape: f32[1,1], index: 4, kind: input, shape index: {}]   ;;  %s1721_s5 = inlined_call_operand.hbm [shape: f32[1,1000], index: 5, kind: output, shape index: {}]  }
   0x1   :  { %v10_v0 = vstv %s1720_s4 }
   0x2   :  { %11 = vst [vmem:[#allocation2] sm:$0x1] %v10_v0 }
   0x3   :  { %12 = vsyncpa [#allocation4], 0 }
   0x4   :  { %14 = vsyncpa [#allocation4 + $0x1], 0  ;;  %s1432_s20 = smov 0   ;;  %s1434_s21 = smov 0  }
   0x5   :  { %s1436_s22 = smov 0   ;;  %s1438_s23 = smov 0  }
   0x6 LB: > { %s1007_s4 = sadd.s32 4294967295, %s1393_s23   ;;  %s1008_s24 = sadd.s32 4294967294, %s1393_s23   ;;  %s1393_s23 = sphi %s1438_s23, %s1729_s23   ;;  %s1389_s22 = sphi %s1436_s22, %s1728_s22   ;;  %s1385_s21 = sphi %s1434_s21, %s1727_s21   ;;  %s1381_s20 = sphi %s1432_s20, %s1726_s20  }
   0x7   : > { %s1455_s25 = sadd.s32 1, %s1393_s23   ;;  %s137_s26 = sadd.s32 1, %s1389_s22 }
   0x8   : > { %s134_s27 = ssub.s32 %s1393_s23, %s1455_s25  ;;  %p147_p0 = scmp.ne.s32.totalorder %s1389_s22, %s1385_s21 }
   0x9   : > { %p135_p1 = scmp.eq.s32.totalorder %s134_s27, 0  ;;  %p148_p2 = scmp.eq.s32.totalorder %s1007_s4, 1 }
   0xa   : > { %p153_p3 = scmp.ne.s32.totalorder %s1385_s21, %s1381_s20  ;;  %p154_p4 = scmp.eq.s32.totalorder %s1008_s24, 1 }
   0xb   : > { %s1465_s28 = scalar_select %p135_p1, %s1389_s22, %s137_s26  }
   0xc   : > { %p1467_p5 = por %p148_p2, %p147_p0  ;;  %p1471_p6 = por %p154_p4, %p153_p3 }
   0xd   : > { %p1011_p7 = scmp.ge.s32.totalorder %s1393_s23, 1  ;;  %p201_p8 = scmp.lt.s32.totalorder %s1393_s23, 3 }
   0xf   : > { %p202_p9 = pnand %p1011_p7, %p201_p8 }
  0x10   : > { %s1477_s6 = sshll.u32 (!%p202_p9), %s1007_s4, 6  ;;  %vm340_vm0 = vcmask (!%p202_p9), 187392   ;;  %v1482_v1 = vld [vmem:[%s1717_s1] sm:$0xff] (!%p202_p9)  ;;  %v1395_v3 = vmov (!%p202_p9), 0   ;;  %v318_v4 = vld [vmem:[%s1718_s2 + $0x10] sm:$0xff] (!%p202_p9)  ;;  %v317_v5 = vld [vmem:[%s1718_s2 + $0x8] sm:$0xff] (!%p202_p9) }
  0x11   : > { %205 = sbr.rel (%p202_p9) target bundleno = 571 (0x23b), region = 40  ;;  %p238_p10 = scmp.lt.s32.totalorder (!%p202_p9), %s1477_s6, 124  ;;  %1127 = vmatprep.mubr.msk.f32.mxu0 (!%p202_p9), %vm340_vm0, %v1482_v1  ;;  %1167 = vmatprep.mubr.msk.f32.mxu1 (!%p202_p9), %vm340_vm0, %v1482_v1  ;;  %v316_v2 = vld [vmem:[%s1718_s2] sm:$0xff] (!%p202_p9)  ;;  %v319_v6 = vld [vmem:[%s1718_s2 + $0x18] sm:$0xff] (!%p202_p9)  ;;  %vm1509_vm1 = vmpackc.low (!%p202_p9), %vm340_vm0, %vm340_vm0  ;;  %v1396_v7 = vmov (!%p202_p9), 0.0   ;;  %vm750_vm2 = vcmask (!%p202_p9), 261120  }
  0x12   : > { %1329 = vset.pattern.permute.xlu0 (!%p202_p9), %v1395_v3  ;;  %1330 = vset.pattern.permute.xlu1 (!%p202_p9), %v1395_v3  ;;  %v740_v11 = vld [vmem:[#allocation2] sm:$0x1] (!%p202_p9)  ;;  %s1674_s19 = scalar_lea.hbm (!%p202_p9), %s1721_s5, %s1477_s6  ;;  %s1398_s26 = smov (!%p202_p9), [#allocation3]  }
  0x13   : > { %322 = vperm.xlu0 (!%p202_p9), %1329, %v316_v2   ;;  %332 = vperm.xlu1 (!%p202_p9), %1330, %v318_v4   ;;  %s1335_s27 = sshll.u32 (!%p202_p9), %s1398_s26, 4  ;;  %s1336_s27 = int_to_ptr.vmem [resolvable:$false] %s1335_s27 }
  0x14   : > { %s1337_s7 = scalar_lea.vmem (!%p202_p9), %s1336_s27, 128 }
  0x17   : > { %327 = vperm.xlu0 (!%p202_p9), %1329, %v317_v5   ;;  %337 = vperm.xlu1 (!%p202_p9), %1330, %v319_v6  }
  0x18   : > { %s239_s13 = scalar_select %p238_p10, %s1477_s6, 124 }
  0x1a   : > { %s1014_s18 = sshll.u32 %s239_s13, 3  ;;  %s230_s13 = sand.u32 1, %s1385_s21  }
  0x1b   : > { %s1505_s24 = scalar_lea.vmem %s1716_s0, %s1014_s18  ;;  %743 = vperm.xlu0 %1329, %v740_v11   ;;  %s1012_s14 = sshll.u32 %s230_s13, 2 }
  0x1c   : > { %v264_v8 = vld [vmem:[%s1505_s24 + $0x80] sm:$0xff]  ;;  %v265_v9 = vld [vmem:[%s1505_s24 + $0x88] sm:$0xff]  ;;  %v266_v20 = vld [vmem:[%s1505_s24 + $0x90] sm:$0xff]  ;;  %s232_s15 = scalar_lea.vmem [#allocation3], %s1012_s14  ;;  %s935_s4 = scalar_lea.sflag [#allocation4], %s230_s13 }
  0x1d   : > { %v296_v10 = vld [vmem:[%s1505_s24 + $0x180] sm:$0xff]  ;;  %v1175_v12 = vpack.c.bf16 %v265_v9, %v264_v8  ;;  %v297_v13 = vld [vmem:[%s1505_s24 + $0x188] sm:$0xff]  ;;  %v267_v22 = vld [vmem:[%s1505_s24 + $0x98] sm:$0xff]  ;;  %s949_s16 = sshll.u32 %s232_s15, 4  ;;  %s1676_s16 = int_to_ptr.vmem [resolvable:$true] %s949_s16 }
  0x1e   : > { %v248_v14 = vld [vmem:[%s1505_s24] sm:$0xff]  ;;  %v249_v15 = vld [vmem:[%s1505_s24 + $0x8] sm:$0xff]  ;;  %v1223_v16 = vpack.c.bf16 %v297_v13, %v296_v10  ;;  %v298_v23 = vld [vmem:[%s1505_s24 + $0x190] sm:$0xff]  ;;  %v1181_v25 = vpack.c.bf16 %v267_v22, %v266_v20  ;;  %p1338_p0 = scmp.lt.s32.totalorder %s1676_s16, %s1336_s27 }
  0x1f   : > { %v1178_v17 = vpack.c.bf16 %v249_v15, %v248_v14  ;;  %v280_v18 = vld [vmem:[%s1505_s24 + $0x100] sm:$0xff]  ;;  %v281_v19 = vld [vmem:[%s1505_s24 + $0x108] sm:$0xff]  ;;  %1177 = vmatprep.subr.msk.bf16.mxu0 %vm1509_vm1, %v1175_v12  ;;  %v299_v24 = vld [vmem:[%s1505_s24 + $0x198] sm:$0xff] }
  0x20   : > { %v1226_v21 = vpack.c.bf16 %v281_v19, %v280_v18  ;;  %1225 = vmatprep.subr.msk.bf16.mxu1 %vm1509_vm1, %v1223_v16  ;;  %v1229_v26 = vpack.c.bf16 %v299_v24, %v298_v23  ;;  %v250_v27 = vld [vmem:[%s1505_s24 + $0x10] sm:$0xff]  ;;  %v251_v28 = vld [vmem:[%s1505_s24 + $0x18] sm:$0xff]  ;;  %v268_v31 = vld [vmem:[%s1505_s24 + $0xa0] sm:$0xff] }
  0x21   : > { %1180 = vmatpush3.bf16.xpose.msk.msra.mxu0 %vm1509_vm1, %v1178_v17  ;;  %v282_v29 = vld [vmem:[%s1505_s24 + $0x110] sm:$0xff]  ;;  %v283_v30 = vld [vmem:[%s1505_s24 + $0x118] sm:$0xff]  ;;  %v269_v32 = vld [vmem:[%s1505_s24 + $0xa8] sm:$0xff]  ;;  %v1184_v35 = vpack.c.bf16 %v251_v28, %v250_v27 }
  0x22   : > { %1228 = vmatpush3.bf16.xpose.msk.msra.mxu1 %vm1509_vm1, %v1226_v21  ;;  %1183 = vmatprep.subr.msk.bf16.mxu0 %vm1509_vm1, %v1181_v25  ;;  %v300_v33 = vld [vmem:[%s1505_s24 + $0x1a0] sm:$0xff]  ;;  %v301_v34 = vld [vmem:[%s1505_s24 + $0x1a8] sm:$0xff]  ;;  %v1232_v36 = vpack.c.bf16 %v283_v30, %v282_v29  ;;  %v1187_v37 = vpack.c.bf16 %v269_v32, %v268_v31  ;;  %v270_v43 = vld [vmem:[%s1505_s24 + $0xb0] sm:$0xff] }
  0x23   : > { %1231 = vmatprep.subr.msk.bf16.mxu1 %vm1509_vm1, %v1229_v26  ;;  %v1235_v38 = vpack.c.bf16 %v301_v34, %v300_v33  ;;  %v252_v39 = vld [vmem:[%s1505_s24 + $0x20] sm:$0xff]  ;;  %v253_v40 = vld [vmem:[%s1505_s24 + $0x28] sm:$0xff]  ;;  %v271_v44 = vld [vmem:[%s1505_s24 + $0xb8] sm:$0xff] }
  0x24   : > { %v284_v41 = vld [vmem:[%s1505_s24 + $0x120] sm:$0xff]  ;;  %v285_v42 = vld [vmem:[%s1505_s24 + $0x128] sm:$0xff]  ;;  %v302_v45 = vld [vmem:[%s1505_s24 + $0x1b0] sm:$0xff]  ;;  %v1190_v47 = vpack.c.bf16 %v253_v40, %v252_v39  ;;  %v1193_v49 = vpack.c.bf16 %v271_v44, %v270_v43 }
  0x25   : > { %v303_v46 = vld [vmem:[%s1505_s24 + $0x1b8] sm:$0xff]  ;;  %v1238_v48 = vpack.c.bf16 %v285_v42, %v284_v41  ;;  %v254_v51 = vld [vmem:[%s1505_s24 + $0x30] sm:$0xff]  ;;  %v272_v55 = vld [vmem:[%s1505_s24 + $0xc0] sm:$0xff] }
  0x26   : > { %v1241_v50 = vpack.c.bf16 %v303_v46, %v302_v45  ;;  %v255_v52 = vld [vmem:[%s1505_s24 + $0x38] sm:$0xff]  ;;  %v286_v53 = vld [vmem:[%s1505_s24 + $0x130] sm:$0xff]  ;;  %v273_v56 = vld [vmem:[%s1505_s24 + $0xc8] sm:$0xff] }
  0x27   : > { %v287_v54 = vld [vmem:[%s1505_s24 + $0x138] sm:$0xff]  ;;  %v304_v57 = vld [vmem:[%s1505_s24 + $0x1c0] sm:$0xff]  ;;  %v305_v58 = vld [vmem:[%s1505_s24 + $0x1c8] sm:$0xff]  ;;  %v1196_v59 = vpack.c.bf16 %v255_v52, %v254_v51  ;;  %v1199_v61 = vpack.c.bf16 %v273_v56, %v272_v55 }
  0x28   : > { %v1244_v60 = vpack.c.bf16 %v287_v54, %v286_v53  ;;  %v1247_v62 = vpack.c.bf16 %v305_v58, %v304_v57  ;;  %v256_v63 = vld [vmem:[%s1505_s24 + $0x40] sm:$0xff]  ;;  %v257_v0 = vld [vmem:[%s1505_s24 + $0x48] sm:$0xff]  ;;  %v274_v4 = vld [vmem:[%s1505_s24 + $0xd0] sm:$0xff] }
  0x29   : > { %1186 = vmatpush3.bf16.xpose.msk.msra.mxu0 %vm1509_vm1, %v1184_v35  ;;  %v288_v2 = vld [vmem:[%s1505_s24 + $0x140] sm:$0xff]  ;;  %v289_v3 = vld [vmem:[%s1505_s24 + $0x148] sm:$0xff]  ;;  %v275_v5 = vld [vmem:[%s1505_s24 + $0xd8] sm:$0xff]  ;;  %v1202_v9 = vpack.c.bf16 %v257_v0, %v256_v63 }
  0x2a   : > { %1234 = vmatpush3.bf16.xpose.msk.msra.mxu1 %vm1509_vm1, %v1232_v36  ;;  %1189 = vmatprep.subr.msk.bf16.mxu0 %vm1509_vm1, %v1187_v37  ;;  %v306_v6 = vld [vmem:[%s1505_s24 + $0x1d0] sm:$0xff]  ;;  %v307_v8 = vld [vmem:[%s1505_s24 + $0x1d8] sm:$0xff]  ;;  %v1250_v10 = vpack.c.bf16 %v289_v3, %v288_v2  ;;  %v1205_v11 = vpack.c.bf16 %v275_v5, %v274_v4  ;;  %v276_v17 = vld [vmem:[%s1505_s24 + $0xe0] sm:$0xff] }
  0x2b   : > { %1237 = vmatprep.subr.msk.bf16.mxu1 %vm1509_vm1, %v1235_v38  ;;  %v1253_v12 = vpack.c.bf16 %v307_v8, %v306_v6  ;;  %v258_v13 = vld [vmem:[%s1505_s24 + $0x50] sm:$0xff]  ;;  %v259_v14 = vld [vmem:[%s1505_s24 + $0x58] sm:$0xff]  ;;  %v277_v18 = vld [vmem:[%s1505_s24 + $0xe8] sm:$0xff] }
  0x2c   : > { %v290_v15 = vld [vmem:[%s1505_s24 + $0x150] sm:$0xff]  ;;  %v291_v16 = vld [vmem:[%s1505_s24 + $0x158] sm:$0xff]  ;;  %v308_v19 = vld [vmem:[%s1505_s24 + $0x1e0] sm:$0xff]  ;;  %v1208_v21 = vpack.c.bf16 %v259_v14, %v258_v13  ;;  %v1211_v23 = vpack.c.bf16 %v277_v18, %v276_v17 }
  0x2d   : > { %v309_v20 = vld [vmem:[%s1505_s24 + $0x1e8] sm:$0xff]  ;;  %v1256_v22 = vpack.c.bf16 %v291_v16, %v290_v15  ;;  %v260_v25 = vld [vmem:[%s1505_s24 + $0x60] sm:$0xff]  ;;  %v278_v29 = vld [vmem:[%s1505_s24 + $0xf0] sm:$0xff] }
  0x2e   : > { %v1259_v24 = vpack.c.bf16 %v309_v20, %v308_v19  ;;  %v261_v26 = vld [vmem:[%s1505_s24 + $0x68] sm:$0xff]  ;;  %v292_v27 = vld [vmem:[%s1505_s24 + $0x160] sm:$0xff]  ;;  %v279_v30 = vld [vmem:[%s1505_s24 + $0xf8] sm:$0xff] }
  0x2f   : > { %v293_v28 = vld [vmem:[%s1505_s24 + $0x168] sm:$0xff]  ;;  %v310_v31 = vld [vmem:[%s1505_s24 + $0x1f0] sm:$0xff]  ;;  %v311_v32 = vld [vmem:[%s1505_s24 + $0x1f8] sm:$0xff]  ;;  %v1214_v33 = vpack.c.bf16 %v261_v26, %v260_v25  ;;  %v1217_v35 = vpack.c.bf16 %v279_v30, %v278_v29 }
  0x30   : > { %v1262_v34 = vpack.c.bf16 %v293_v28, %v292_v27  ;;  %v1265_v36 = vpack.c.bf16 %v311_v32, %v310_v31  ;;  %v262_v37 = vld [vmem:[%s1505_s24 + $0x70] sm:$0xff]  ;;  %v263_v38 = vld [vmem:[%s1505_s24 + $0x78] sm:$0xff]  ;;  %v313_v43 = vld [vmem:[%s1717_s1 + $0x8] sm:$0xff] }
  0x31   : > { %1192 = vmatpush3.bf16.xpose.msk.msra.mxu0 %vm1509_vm1, %v1190_v47  ;;  %v294_v39 = vld [vmem:[%s1505_s24 + $0x170] sm:$0xff]  ;;  %v295_v40 = vld [vmem:[%s1505_s24 + $0x178] sm:$0xff]  ;;  %v1220_v41 = vpack.c.bf16 %v263_v38, %v262_v37  ;;  %s1331_s24 = scalar_lea.vmem %s1676_s16, 64 }
  0x32   : > { %1240 = vmatpush3.bf16.xpose.msk.msra.mxu1 %vm1509_vm1, %v1238_v48  ;;  %1195 = vmatprep.subr.msk.bf16.mxu0 %vm1509_vm1, %v1193_v49  ;;  %v1268_v42 = vpack.c.bf16 %v295_v40, %v294_v39  ;;  %v314_v44 = vld [vmem:[%s1717_s1 + $0x10] sm:$0xff]  ;;  %p1332_p11 = scmp.ne.s32.totalorder %s1676_s16, %s1331_s24  ;;  %p1339_p1 = scmp.lt.s32.totalorder %s1337_s7, %s1331_s24 }
  0x33   : > { %1243 = vmatprep.subr.msk.bf16.mxu1 %vm1509_vm1, %v1241_v50 }
  0x34   : > { %p1333_p12 = pnand %p1332_p11, %p1467_p5  ;;  %p1340_p2 = por %p1339_p1, %p1338_p0 }
  0x36   : > { %p1334_p13 = pneg %p1333_p12 }
  0x38   : > { %p1341_p3 = pnand %p1340_p2, %p1334_p13 }
  0x39   : > { %1198 = vmatpush3.bf16.xpose.msk.msra.mxu0 %vm1509_vm1, %v1196_v59 }
  0x3a   : > { %1246 = vmatpush3.bf16.xpose.msk.msra.mxu1 %vm1509_vm1, %v1244_v60  ;;  %1201 = vmatprep.subr.msk.bf16.mxu0 %vm1509_vm1, %v1199_v61 }
  0x3b   : > { %1249 = vmatprep.subr.msk.bf16.mxu1 %vm1509_vm1, %v1247_v62 }
  0x41   : > { %1204 = vmatpush3.bf16.xpose.msk.msra.mxu0 %vm1509_vm1, %v1202_v9 }
  0x42   : > { %1252 = vmatpush3.bf16.xpose.msk.msra.mxu1 %vm1509_vm1, %v1250_v10  ;;  %1207 = vmatprep.subr.msk.bf16.mxu0 %vm1509_vm1, %v1205_v11 }
  0x43   : > { %1255 = vmatprep.subr.msk.bf16.mxu1 %vm1509_vm1, %v1253_v12 }
  0x49   : > { %1210 = vmatpush3.bf16.xpose.msk.msra.mxu0 %vm1509_vm1, %v1208_v21 }
  0x4a   : > { %1258 = vmatpush3.bf16.xpose.msk.msra.mxu1 %vm1509_vm1, %v1256_v22  ;;  %1213 = vmatprep.subr.msk.bf16.mxu0 %vm1509_vm1, %v1211_v23 }
  0x4b   : > { %1261 = vmatprep.subr.msk.bf16.mxu1 %vm1509_vm1, %v1259_v24 }
  0x51   : > { %1216 = vmatpush3.bf16.xpose.msk.msra.mxu0 %vm1509_vm1, %v1214_v33 }
  0x52   : > { %1264 = vmatpush3.bf16.xpose.msk.msra.mxu1 %vm1509_vm1, %v1262_v34  ;;  %1219 = vmatprep.subr.msk.bf16.mxu0 %vm1509_vm1, %v1217_v35 }
  0x53   : > { %1267 = vmatprep.subr.msk.bf16.mxu1 %vm1509_vm1, %v1265_v36 }
  0x59   : > { %1222 = vmatpush3.bf16.xpose.msk.msra.mxu0 %vm1509_vm1, %v1220_v41 }
  0x5a   : > { %1270 = vmatpush3.bf16.xpose.msk.msra.mxu1 %vm1509_vm1, %v1268_v42 }
  0x60   : > { %1128 = vmatmul.mubr.msk.f32.vlgmr.msra.gmra.mrb[0].mxu0 %vm340_vm0, %v1482_v1 }
  0x61   : > { %1168 = vmatmul.mubr.msk.f32.vlgmr.msra.gmra.mrb[0].mxu1 %vm340_vm0, %v1482_v1  ;;  %1129 = vmatprep.mubr.msk.f32.mxu0 %vm340_vm0, %v313_v43  ;;  %v315_v1 = vld [vmem:[%s1717_s1 + $0x18] sm:$0xff] }
  0x62   : > { %1169 = vmatprep.mubr.msk.f32.mxu1 %vm340_vm0, %v313_v43 }
  0x64   : > { %1130 = vmatmul.mubr.msk.f32.gmra.mrb[2].mxu0 %vm340_vm0, %v313_v43 }
  0x65   : > { %1170 = vmatmul.mubr.msk.f32.gmra.mrb[2].mxu1 %vm340_vm0, %v313_v43  ;;  %1131 = vmatprep.mubr.msk.f32.mxu0 %vm340_vm0, %v314_v44  ;;  %v739_v43 = vld [vmem:[%s1719_s3] sm:$0x1] }
  0x66   : > { %1171 = vmatprep.mubr.msk.f32.mxu1 %vm340_vm0, %v314_v44 }
  0x68   : > { %1132 = vmatmul.mubr.msk.f32.gmra.mrb[4].mxu0 %vm340_vm0, %v314_v44 }
  0x69   : > { %1172 = vmatmul.mubr.msk.f32.gmra.mrb[4].mxu1 %vm340_vm0, %v314_v44  ;;  %1133 = vmatprep.mubr.msk.f32.mxu0 %vm340_vm0, %v315_v1  ;;  %v746_v44 = vlaneseq }
  0x6a   : > { %1173 = vmatprep.mubr.msk.f32.mxu1 %vm340_vm0, %v315_v1 }
  0x6b   : > { %vm931_vm3 = vcmp.lt.s32.totalorder %v746_v44, 512 }
  0x6c   : > { %1134 = vmatmul.mubr.msk.f32.gmra.mrb[6].mxu0 %vm340_vm0, %v315_v1 }
  0x6d   : > { %1174 = vmatmul.mubr.msk.f32.gmra.mrb[6].mxu1 %vm340_vm0, %v315_v1  ;;  %818 = vmatprep.mubr.f32.mxu0 %v1396_v7  ;;  %v747_v1 = vshrl.u32 %v746_v44, 7 }
  0x6e   : > { %889 = vmatprep.mubr.f32.mxu1 %v1396_v7 }
  0x6f   : > { %v748_v7 = vsub.s32 0, %v747_v1 }
  0x92   : > { %v323_v45 = vpop.permute.xlu0 %322  ;;  %v333_v60 = vpop.permute.xlu1 %332 }
  0x96   : > { %v328_v51 = vpop.permute.xlu0 %327  ;;  %v338_v20 = vpop.permute.xlu1 %337 }
 0x133   : > { %v611_v46 = vpop.f32.mrb[0].mxu0 }
 0x134   : > { %v700_v47 = vpop.f32.mrb[0].mxu1  ;;  %v613_v48 = vpop.f32.mrb[1].mxu0  ;;  %v612_v50 = vadd.f32 %v611_v46, %v323_v45 }
 0x135   : > { %v702_v49 = vpop.f32.mrb[1].mxu1  ;;  %v701_v52 = vadd.f32 %v700_v47, %v323_v45  ;;  %v614_v53 = vadd.f32 %v613_v48, %v323_v45  ;;  %v744_v47 = vpop.permute.xlu0 %743 }
 0x136   : > { %v703_v55 = vadd.f32 %v702_v49, %v323_v45  ;;  %v723_v63 = vmax.f32 %v612_v50, 0.0  ;;  %v1397_v45 = vmov 1966171168   ;;  %v749_v48 = vrot.slane %v744_v47, %v748_v7 }
 0x137   : > { %v617_v54 = vpop.f32.mrb[2].mxu0  ;;  %v725_v3 = vmax.f32 %v701_v52, 0.0  ;;  %v724_v4 = vmax.f32 %v614_v53, 0.0  ;;  %v907_v46 = vunpack.c.l.s4 %v1397_v45 }
 0x138   : > { %v618_v56 = vadd.f32 %v617_v54, %v328_v51  ;;  %v706_v57 = vpop.f32.mrb[2].mxu1  ;;  %v619_v58 = vpop.f32.mrb[3].mxu0  ;;  %v726_v9 = vmax.f32 %v703_v55, 0.0 }
 0x139   : > { %v707_v59 = vadd.f32 %v706_v57, %v328_v51  ;;  %v620_v61 = vadd.f32 %v619_v58, %v328_v51  ;;  %v708_v62 = vpop.f32.mrb[3].mxu1  ;;  %v908_v49 = vunpack.c.0.s8 %v907_v46 }
 0x13a   : > { %v727_v0 = vmax.f32 %v618_v56, 0.0  ;;  %v709_v2 = vadd.f32 %v708_v62, %v328_v51 }
 0x13b   : > { %v729_v5 = vmax.f32 %v707_v59, 0.0  ;;  %v728_v6 = vmax.f32 %v620_v61, 0.0  ;;  %v623_v8 = vpop.f32.mrb[4].mxu0  ;;  %v911_v59 = vsub.s32 %v908_v49, %v747_v1 }
 0x13c   : > { %v1273_v10 = vpack.c.bf16 %v727_v0, %v723_v63  ;;  %v730_v11 = vmax.f32 %v709_v2, 0.0  ;;  %v712_v12 = vpop.f32.mrb[4].mxu1  ;;  %v625_v13 = vpop.f32.mrb[5].mxu0  ;;  %v624_v18 = vadd.f32 %v623_v8, %v333_v60 }
 0x13d   : > { %v1281_v14 = vpack.c.bf16 %v729_v5, %v725_v3  ;;  %v1271_v15 = vpack.c.bf16 %v728_v6, %v724_v4  ;;  %v714_v16 = vpop.f32.mrb[5].mxu1  ;;  %v713_v19 = vadd.f32 %v712_v12, %v333_v60  ;;  %v626_v21 = vadd.f32 %v625_v13, %v333_v60 }
 0x13e   : > { %v1279_v17 = vpack.c.bf16 %v730_v11, %v726_v9  ;;  %v715_v23 = vadd.f32 %v714_v16, %v333_v60  ;;  %v731_v30 = vmax.f32 %v624_v18, 0.0 }
 0x13f   : > { %v629_v22 = vpop.f32.mrb[6].mxu0  ;;  %1272 = vmatprep.subr.bf16.mxu0 %v1271_v15  ;;  %v733_v33 = vmax.f32 %v713_v19, 0.0  ;;  %v732_v34 = vmax.f32 %v626_v21, 0.0 }
 0x140   : > { %v630_v24 = vadd.f32 %v629_v22, %v338_v20  ;;  %v718_v25 = vpop.f32.mrb[6].mxu1  ;;  %1280 = vmatprep.subr.bf16.mxu1 %v1279_v17  ;;  %v631_v26 = vpop.f32.mrb[7].mxu0  ;;  %1274 = vmatpush1.bf16.msra.mxu0 %v1273_v10  ;;  %v734_v37 = vmax.f32 %v715_v23, 0.0 }
 0x141   : > { %v719_v27 = vadd.f32 %v718_v25, %v338_v20  ;;  %v632_v28 = vadd.f32 %v631_v26, %v338_v20  ;;  %v720_v29 = vpop.f32.mrb[7].mxu1  ;;  %1282 = vmatpush1.bf16.msra.mxu1 %v1281_v14 }
 0x142   : > { %v735_v31 = vmax.f32 %v630_v24, 0.0  ;;  %v721_v32 = vadd.f32 %v720_v29, %v338_v20 }
 0x143   : > { %v737_v35 = vmax.f32 %v719_v27, 0.0  ;;  %v736_v36 = vmax.f32 %v632_v28, 0.0 }
 0x144   : > { %v1277_v38 = vpack.c.bf16 %v735_v31, %v731_v30  ;;  %v738_v39 = vmax.f32 %v721_v32, 0.0 }
 0x145   : > { %v1285_v40 = vpack.c.bf16 %v737_v35, %v733_v33  ;;  %v1275_v41 = vpack.c.bf16 %v736_v36, %v732_v34 }
 0x146   : > { %v1283_v42 = vpack.c.bf16 %v738_v39, %v734_v37 }
 0x147   : > { %1276 = vmatprep.subr.bf16.mxu0 %v1275_v41 }
 0x148   : > { %1284 = vmatprep.subr.bf16.mxu1 %v1283_v42  ;;  %1278 = vmatpush1.bf16.msra.mxu0 %v1277_v38 }
 0x149   : > { %1286 = vmatpush1.bf16.msra.mxu1 %v1285_v40 }
 0x14b   : > { %1087 = vmatmul.mubr.msk.f32.vlgmr.msra.gmra.mrb[8].mxu0 %vm750_vm2, %v739_v43 }
 0x14c   : > { %1088 = vmatmul.mubr.msk.f32.vlgmr.msra.gmra.mrb[8].mxu1 %vm750_vm2, %v739_v43 }
 0x21e   : > { %v820_v50 = vpop.f32.mrb[8].mxu0 }
 0x21f   : > { %v821_v51 = vadd.f32 %v820_v50, %v749_v48  ;;  %v891_v52 = vpop.f32.mrb[8].mxu1  ;;  %v822_v53 = vpop.f32.mrb[9].mxu0 }
 0x220   : > { %v892_v54 = vadd.f32 %v891_v52, %v749_v48  ;;  %v823_v55 = vadd.f32 %v822_v53, %v749_v48  ;;  %v893_v56 = vpop.f32.mrb[9].mxu1 }
 0x221   : > { %v896_v57 = vmul.f32 0.055, %v821_v51  ;;  %v894_v58 = vadd.f32 %v893_v56, %v749_v48 }
 0x222   : > { %v898_v60 = vmul.f32 0.055, %v892_v54  ;;  %v897_v61 = vmul.f32 0.055, %v823_v55 }
 0x223   : > { %v899_v62 = vmul.f32 0.055, %v894_v58 }
 0x224   : > { %v904_v63 = vcombine.low %v896_v57, %v897_v61 }
 0x225   : > { %v905_v0 = vcombine.low %v898_v60, %v899_v62 }
 0x226   : > { %v912_v2 = vrot.slane %v904_v63, %v911_v59 }
 0x227   : > { %v919_v3 = vrot.slane %v905_v0, %v911_v59 }
 0x229   : > { %v920_v4 = vcombine.low %v912_v2, %v919_v3 }
 0x22b   : > { %v927_v5 = vrot.slane %v920_v4, %v911_v59 }
 0x22d   : > { %933 = vst.msk [vmem:[%s232_s15] sm:$0xf] %vm931_vm3, %v927_v5 }
 0x22e   : > { %1344 = shalt.err (!%p1341_p3)
}
 0x22f   : > { %s1345_s6 = scalar_lea.hbm %s1674_s19, 64  ;;  %s1349_s10 = scalar_lea.hbm %s1721_s5, 128 }
 0x230   : > { %p1346_p4 = scmp.ne.s32.totalorder %s1674_s19, %s1345_s6  ;;  %p1350_p9 = scmp.lt.u32.totalorder %s1674_s19, %s1721_s5 }
 0x231   : > { %p1351_p10 = scmp.lt.u32.totalorder %s1349_s10, %s1345_s6  ;;  %p1353_p12 = scmp.lt.u32.totalorder %s1345_s6, %s1674_s19 }
 0x232   : > { %p1347_p7 = pnand %p1346_p4, %p1467_p5 }
 0x233   : > { %p1352_p11 = por %p1351_p10, %p1350_p9 }
 0x234   : > { %p1348_p8 = pneg %p1347_p7 }
 0x235   : > { %p1354_p13 = por %p1353_p12, %p1352_p11 }
 0x237   : > { %p1355_p0 = pnand %p1354_p13, %p1348_p8 }
 0x239   : > { %1358 = shalt.err (!%p1355_p0)
}
 0x23a   : > { %1287 = dma.vmem_to_hbm [thread:$0]  (%p1467_p5), %s1676_s16, 64, %s1674_s19, %s935_s4  }
 0x23b PF: > { %p1293_p1 = scmp.ge.s32.totalorder %s1393_s23, 2  ;;  %s961_s13 = sand.u32 1, %s1381_s20  }
 0x23c   : > { %s962_s14 = scalar_lea.sflag [#allocation4], %s961_s13 }
 0x23d   : > { %p1290_p2 = pnand %p1293_p1, %p1471_p6 }
 0x23f   : > { %1376 = dma.done.wait (!%p1290_p2), %s962_s14, 64  }
 0x240   : > { %1378 = vsyncadd (!%p1290_p2), %s962_s14, 4294967232  ;;  %p17_p3 = scmp.ge.s32.totalorder %s1455_s25, 4   ;;  %s1726_s20 = smov %s1385_s21 }
 0x241   : > { %s1727_s21 = smov %s1389_s22  ;;  %s1728_s22 = smov %s1465_s28 }
 0x242   : > { %s1729_s23 = smov %s1455_s25  ;;  %19 = sbr.rel (!%p17_p3) target bundleno = 6 (0x6), region = 75 }
 0x249   :  { %967 = vsyncpa [#allocation4], 1 }
 0x24a   :  { %969 = vsyncpa [#allocation4 + $0x1], 1 }

</bundles_post_ra>
